<compile_context>
chip_gen: v7x
topology: tpu7x:2x2x1
jax: 0.10.0
libtpu: 0.0.40
codegen_flags: <defaults>
</compile_context>

<pallas_src>
import math

import jax
import jax.numpy as jnp
from jax.experimental import pallas as pl
from jax.experimental.pallas import tpu as pltpu

_LANE = 128


# ----------------------------------------------------------------------------
# Tiling helpers
# ----------------------------------------------------------------------------
def _pick_tile(n, target):
    """Largest tile t <= target with n % t == 0 and (t % 8 == 0 or t == n)."""
    if n <= target:
        return n
    t = (target // 8) * 8
    while t >= 8:
        if n % t == 0:
            return t
        t -= 8
    # TODO(synk): pad n up to a tile multiple instead of a single whole-array block.
    return n


def _row_target(cols, itemsize, block_bytes):
    return max(8, block_bytes // max(1, cols * itemsize))


def _cparams(need_bytes):
    limit = int(min(48 * 2**20, max(32 * 2**20, 2 * need_bytes)))
    return pltpu.CompilerParams(
        dimension_semantics=("parallel",), vmem_limit_bytes=limit)


def _lane_dense_views(xs):
    """Return lane-dense 2-D views of the K layer tensors + original shape + flag."""
    n, d = xs[0].shape
    if d % _LANE == 0:
        return list(xs), (n, d), False
    if (n * d) % _LANE == 0:
        r = (n * d) // _LANE
        return [x.reshape(r, _LANE) for x in xs], (n, d), True
    # TODO(synk): pad N*D to a multiple of 128 for fully lane-dense stores.
    return list(xs), (n, d), False


# ----------------------------------------------------------------------------
# Kernel: elementwise max over the K layer inputs        (mode == 'max')
# ----------------------------------------------------------------------------
def _make_max_kernel(K):
    def kernel(*refs):                       # K inputs, then output
        o_ref = refs[K]
        acc = refs[0][...]
        for k in range(1, K):
            acc = jnp.maximum(acc, refs[k][...])
        o_ref[...] = acc
    return kernel


def jk_max(xs):
    K = len(xs)
    views, orig, flat = _lane_dense_views(xs)
    R, C = views[0].shape
    itemsize = jnp.dtype(views[0].dtype).itemsize
    block_bytes = min(1 << 20, max(64 * 1024, (12 << 20) // (2 * (K + 1))))
    tile_r = _pick_tile(R, _row_target(C, itemsize, block_bytes))
    block = pl.BlockSpec((tile_r, C), lambda i: (i, 0))
    need = 2 * (K + 1) * tile_r * C * itemsize
    out = pl.pallas_call(
        _make_max_kernel(K),
        out_shape=jax.ShapeDtypeStruct((R, C), views[0].dtype),
        grid=(R // tile_r,),
        in_specs=[block] * K,
        out_specs=block,
        compiler_params=_cparams(need),
    )(*views)
    return out.reshape(orig) if flat else out


# ----------------------------------------------------------------------------
# Kernel: weighted sum over the K layer inputs           (mean / ppr_* / gpr)
# out[r, c] = sum_k w[k] * x_k[r, c]
# ----------------------------------------------------------------------------
def _make_wsum_kernel(K):
    def kernel(w_ref, *refs):                # SMEM weights, K inputs, output
        o_ref = refs[K]
        acc = refs[0][...].astype(jnp.float32) * w_ref[0]
        for k in range(1, K):
            acc = acc + refs[k][...].astype(jnp.float32) * w_ref[k]
        o_ref[...] = acc.astype(o_ref.dtype)
    return kernel


def jk_weighted_sum(xs, w):
    K = len(xs)
    views, orig, flat = _lane_dense_views(xs)
    R, C = views[0].shape
    itemsize = jnp.dtype(views[0].dtype).itemsize
    block_bytes = min(1 << 20, max(64 * 1024, (12 << 20) // (2 * (K + 1))))
    tile_r = _pick_tile(R, _row_target(C, itemsize, block_bytes))
    block = pl.BlockSpec((tile_r, C), lambda i: (i, 0))
    need = 2 * (K + 1) * tile_r * C * max(itemsize, 4)
    out = pl.pallas_call(
        _make_wsum_kernel(K),
        out_shape=jax.ShapeDtypeStruct((R, C), views[0].dtype),
        grid=(R // tile_r,),
        in_specs=[pl.BlockSpec(memory_space=pltpu.MemorySpace.SMEM)] + [block] * K,
        out_specs=block,
        compiler_params=_cparams(need),
    )(w.astype(jnp.float32), *views)
    return out.reshape(orig) if flat else out


# ----------------------------------------------------------------------------
# Kernel: node-adaptive aggregation                      (mode == 'node_adaptive')
# score_k[n] = tanh(sum_d x_k[n, d] * s[0, d]);  out[n, d] = sum_k x_k[n, d] * score_k[n]
# ----------------------------------------------------------------------------
def _make_node_adaptive_kernel(K):
    def kernel(s_ref, *refs):                # s, K inputs, output
        o_ref = refs[K]
        s = s_ref[...].astype(jnp.float32)                      # (1, D)
        acc = jnp.zeros(o_ref.shape, jnp.float32)
        for k in range(K):
            xk = refs[k][...].astype(jnp.float32)               # (TN, D)
            score = jnp.tanh(jnp.sum(xk * s, axis=-1, keepdims=True))
            acc = acc + xk * score
        o_ref[...] = acc.astype(o_ref.dtype)
    return kernel


def jk_node_adaptive(xs, s):
    K = len(xs)
    N, D = xs[0].shape
    itemsize = jnp.dtype(xs[0].dtype).itemsize
    tile_n = _pick_tile(N, _row_target(D, itemsize, 512 * 1024))
    block = pl.BlockSpec((tile_n, D), lambda i: (i, 0))
    s_spec = pl.BlockSpec((1, D), lambda i: (0, 0))
    need = 2 * (K + 2) * tile_n * D * max(itemsize, 4)
    return pl.pallas_call(
        _make_node_adaptive_kernel(K),
        out_shape=jax.ShapeDtypeStruct((N, D), xs[0].dtype),
        grid=(N // tile_n,),
        in_specs=[s_spec] + [block] * K,
        out_specs=block,
        compiler_params=_cparams(need),
    )(s, *xs)


# ----------------------------------------------------------------------------
# Kernel: bidirectional LSTM + attention softmax + weighted sum   (mode == 'lstm')
# Weights are stored per-gate (PyTorch order i, f, g, o):
#   wih_*: (4, C, H)   whh_*: (4, H, H)   b_* = b_ih + b_hh folded: (4, 1, H)
#   att_w: (2, 1, H)  [forward part, backward part]   att_b: (1,)
# ----------------------------------------------------------------------------
def _make_lstm_kernel(K, H):
    def kernel(*refs):
        x_refs = refs[:K]
        (wih_f_ref, whh_f_ref, b_f_ref,
         wih_b_ref, whh_b_ref, b_b_ref,
         attw_ref, attb_ref, o_ref, hf_sc, hb_sc) = refs[K:]
        TN = x_refs[0].shape[0]

        # bf16 MXU operands, f32 accumulation.
        xs_bf = [x_refs[t][...].astype(jnp.bfloat16) for t in range(K)]

        def gate_proj(wih_ref, b_ref):
            # Hoisted input projections: computed once per tile, outside the recurrence.
            return [[jnp.dot(xs_bf[t], wih_ref[g].astype(jnp.bfloat16),
                             preferred_element_type=jnp.float32)
                     + b_ref[g].astype(jnp.float32)
                     for g in range(4)]
                    for t in range(K)]

        proj_f = gate_proj(wih_f_ref, b_f_ref)
        proj_b = gate_proj(wih_b_ref, b_b_ref)
        whh_f = [whh_f_ref[g].astype(jnp.bfloat16) for g in range(4)]
        whh_b = [whh_b_ref[g].astype(jnp.bfloat16) for g in range(4)]

        def run(proj, whh, order, h_sc):
            h = jnp.zeros((TN, H), jnp.float32)
            c = jnp.zeros((TN, H), jnp.float32)
            for t in order:
                hb = h.astype(jnp.bfloat16)
                gi = proj[t][0] + jnp.dot(hb, whh[0], preferred_element_type=jnp.float32)
                gf = proj[t][1] + jnp.dot(hb, whh[1], preferred_element_type=jnp.float32)
                gg = proj[t][2] + jnp.dot(hb, whh[2], preferred_element_type=jnp.float32)
                go = proj[t][3] + jnp.dot(hb, whh[3], preferred_element_type=jnp.float32)
                i = jax.nn.sigmoid(gi)
                f = jax.nn.sigmoid(gf)
                g = jnp.tanh(gg)
                o = jax.nn.sigmoid(go)
                c = f * c + i * g
                h = o * jnp.tanh(c)
                h_sc[t] = h                       # hidden states live in VMEM scratch

        run(proj_f, whh_f, range(K), hf_sc)                 # forward direction
        run(proj_b, whh_b, range(K - 1, -1, -1), hb_sc)     # backward direction

        # attention logits + softmax over the K layer axis
        awf = attw_ref[0].astype(jnp.float32)               # (1, H)
        awb = attw_ref[1].astype(jnp.float32)               # (1, H)
        attb = attb_ref[0]                                  # scalar from SMEM
        logits = [jnp.sum(hf_sc[t] * awf, axis=-1, keepdims=True)
                  + jnp.sum(hb_sc[t] * awb, axis=-1, keepdims=True) + attb
                  for t in range(K)]
        m = logits[0]
        for t in range(1, K):
            m = jnp.maximum(m, logits[t])
        exps = [jnp.exp(l - m) for l in logits]
        denom = exps[0]
        for t in range(1, K):
            denom = denom + exps[t]
        inv = pl.reciprocal(denom, approx=False)

        out = jnp.zeros(o_ref.shape, jnp.float32)
        for t in range(K):
            out = out + x_refs[t][...].astype(jnp.float32) * (exps[t] * inv)
        o_ref[...] = out.astype(o_ref.dtype)
    return kernel


def jk_lstm(xs, p):
    K = len(xs)
    N, C = xs[0].shape
    H = p['whh_f'].shape[-1]
    tile_n = _pick_tile(N, 256)
    x_block = pl.BlockSpec((tile_n, C), lambda i: (i, 0))

    def inv_spec(arr):
        nd = arr.ndim
        return pl.BlockSpec(arr.shape, lambda i, _nd=nd: (0,) * _nd)

    in_specs = ([x_block] * K
                + [inv_spec(p['wih_f']), inv_spec(p['whh_f']), inv_spec(p['b_f']),
                   inv_spec(p['wih_b']), inv_spec(p['whh_b']), inv_spec(p['b_b']),
                   inv_spec(p['att_w']),
                   pl.BlockSpec(memory_space=pltpu.MemorySpace.SMEM)])

    need = 4 * (2 * K * tile_n * C          # x blocks (double-buffered)
                + 2 * tile_n * C            # output block
                + 2 * K * tile_n * H        # hidden-state scratch (fwd + bwd)
                + 8 * K * tile_n * H        # live gate projections
                + 16 * (C * H + H * H + H) + 2 * H)

    return pl.pallas_call(
        _make_lstm_kernel(K, H),
        out_shape=jax.ShapeDtypeStruct((N, C), xs[0].dtype),
        grid=(N // tile_n,),
        in_specs=in_specs,
        out_specs=x_block,
        scratch_shapes=[pltpu.VMEM((K, tile_n, H), jnp.float32),
                        pltpu.VMEM((K, tile_n, H), jnp.float32)],
        compiler_params=_cparams(need),
    )(*xs, p['wih_f'], p['whh_f'], p['b_f'],
      p['wih_b'], p['whh_b'], p['b_b'],
      p['att_w'], p['att_b'])


# ----------------------------------------------------------------------------
# JAX-side module mirroring JumpingKnowledge(torch.nn.Module)
# ----------------------------------------------------------------------------
class JumpingKnowledge:
    def __init__(self, mode, channels=None, num_layers=None, K=None, key=None):
        self.mode = mode.lower()
        assert self.mode in ['last', 'cat', 'max', 'mean', 'ppr_0.1', 'ppr_0.5',
                             'gpr', 'lstm', 'node_adaptive']
        self.channels = channels
        if key is None:
            key = jax.random.PRNGKey(42)

        if 'ppr' in self.mode:
            assert K is not None
            alpha = float(self.mode.split('_')[-1])
            ks = jnp.arange(K + 1, dtype=jnp.float32)
            w = alpha * (1.0 - alpha) ** ks
            w = w.at[-1].set((1.0 - alpha) ** K)
            self.ppr_weights = w

        if self.mode == 'gpr':
            assert K is not None
            bound = math.sqrt(3.0 / (K + 1))
            g = jax.random.uniform(key, (K + 1,), jnp.float32, 0.0, bound)
            self.gammas = g / jnp.sum(jnp.abs(g))

        if self.mode == 'lstm':
            assert channels is not None and num_layers is not None
            H = num_layers * channels // 2
            self.hidden = H
            bnd = 1.0 / math.sqrt(H)
            ks = jax.random.split(key, 8)
            u = lambda k, shp: jax.random.uniform(k, shp, jnp.float32, -bnd, bnd)
            # per-gate layout (i, f, g, o); b = b_ih + b_hh folded
            self.lstm_params = dict(
                wih_f=u(ks[0], (4, channels, H)),
                whh_f=u(ks[1], (4, H, H)),
                b_f=u(ks[2], (4, 1, H)),
                wih_b=u(ks[3], (4, channels, H)),
                whh_b=u(ks[4], (4, H, H)),
                b_b=u(ks[5], (4, 1, H)),
                att_w=u(ks[6], (2, 1, H)),
                att_b=u(ks[7], (1,)),
            )

        if self.mode == 'node_adaptive':
            assert channels is not None
            a = math.sqrt(6.0 / (1 + channels))      # xavier_uniform on (1, channels)
            self.s = jax.random.uniform(key, (1, channels), jnp.float32, -a, a)

    def __call__(self, xs):
        if self.mode == 'last':
            return xs[-1]                                   # no compute: plain JAX glue
        if self.mode == 'cat':
            return jnp.concatenate(xs, axis=-1)             # no compute: plain JAX glue
        if self.mode == 'max':
            return jk_max(xs)
        if self.mode == 'mean':
            K = len(xs)
            w = jnp.full((K,), 1.0 / K, jnp.float32)
            return jk_weighted_sum(xs, w)
        if 'ppr' in self.mode:
            return jk_weighted_sum(xs, self.ppr_weights)
        if self.mode == 'gpr':
            return jk_weighted_sum(xs, jnp.tanh(self.gammas))
        if self.mode == 'lstm':
            return jk_lstm(xs, self.lstm_params)
        if self.mode == 'node_adaptive':
            return jk_node_adaptive(xs, self.s)
        raise NotImplementedError


# ----------------------------------------------------------------------------
# Pure-JAX reference for the LSTM mode (same math / same bf16 MXU casting)
# ----------------------------------------------------------------------------
def _ref_lstm_jk(xs, p):
    K = len(xs)
    N, C = xs[0].shape
    H = p['whh_f'].shape[-1]

    def mm(a, b):
        return jnp.dot(a.astype(jnp.bfloat16), b.astype(jnp.bfloat16),
                       preferred_element_type=jnp.float32)

    def run(wih, whh, b, order):
        h = jnp.zeros((N, H), jnp.float32)
        c = jnp.zeros((N, H), jnp.float32)
        hs = [None] * K
        for t in order:
            gi = mm(xs[t], wih[0]) + mm(h, whh[0]) + b[0]
            gf = mm(xs[t], wih[1]) + mm(h, whh[1]) + b[1]
            gg = mm(xs[t], wih[2]) + mm(h, whh[2]) + b[2]
            go = mm(xs[t], wih[3]) + mm(h, whh[3]) + b[3]
            i = jax.nn.sigmoid(gi); f = jax.nn.sigmoid(gf)
            g = jnp.tanh(gg);       o = jax.nn.sigmoid(go)
            c = f * c + i * g
            h = o * jnp.tanh(c)
            hs[t] = h
        return hs

    hf = run(p['wih_f'], p['whh_f'], p['b_f'], range(K))
    hb = run(p['wih_b'], p['whh_b'], p['b_b'], range(K - 1, -1, -1))
    logits = jnp.stack(
        [jnp.sum(hf[t] * p['att_w'][0], axis=-1)
         + jnp.sum(hb[t] * p['att_w'][1], axis=-1) + p['att_b'][0]
         for t in range(K)], axis=1)                        # (N, K)
    alpha = jax.nn.softmax(logits, axis=-1)
    x = jnp.stack(xs, axis=0)                               # (K, N, C)
    return jnp.einsum('knc,nk->nc', x, alpha)


if __name__ == "__main__":
    key = jax.random.PRNGKey(0)
    N, D, L = 32, 32, 4                      # nodes, channels, number of layer outputs
    keys = jax.random.split(key, 16)
    xs = [jax.random.normal(keys[i], (N, D), jnp.float32) for i in range(L)]
    x_st = jnp.stack(xs, axis=0)

    # max
    out = jax.block_until_ready(JumpingKnowledge('max')(xs))
    ref = jnp.max(jnp.stack(xs, axis=-1), axis=-1)
    assert out.shape == (N, D) and jnp.allclose(out, ref, atol=1e-5), "max mismatch"

    # mean
    out = jax.block_until_ready(JumpingKnowledge('mean')(xs))
    ref = jnp.mean(jnp.stack(xs, axis=-1), axis=-1)
    assert jnp.allclose(out, ref, atol=1e-4), "mean mismatch"

    # ppr_0.1  (weights have length K+1 == number of xs)
    jk = JumpingKnowledge('ppr_0.1', K=L - 1)
    out = jax.block_until_ready(jk(xs))
    ref = jnp.einsum('i,ijk->jk', jk.ppr_weights, x_st)
    assert jnp.allclose(out, ref, atol=1e-4), "ppr mismatch"

    # gpr
    jk = JumpingKnowledge('gpr', K=L - 1, key=keys[8])
    out = jax.block_until_ready(jk(xs))
    ref = jnp.einsum('i,ijk->jk', jnp.tanh(jk.gammas), x_st)
    assert jnp.allclose(out, ref, atol=1e-4), "gpr mismatch"

    # node_adaptive
    jk = JumpingKnowledge('node_adaptive', channels=D, key=keys[9])
    out = jax.block_until_ready(jk(xs))
    temp = jnp.einsum('KNd,Id->KN', x_st, jk.s)
    ref = jnp.einsum('KNd,KN->Nd', x_st, jnp.tanh(temp))
    assert jnp.allclose(out, ref, atol=1e-3, rtol=1e-3), "node_adaptive mismatch"

    # lstm
    jk = JumpingKnowledge('lstm', channels=D, num_layers=2, key=keys[10])
    out = jax.block_until_ready(jk(xs))
    ref = _ref_lstm_jk(xs, jk.lstm_params)
    assert jnp.allclose(out, ref, atol=1e-2, rtol=1e-2), "lstm mismatch"

    # last / cat (plain glue, no kernel)
    assert jnp.allclose(JumpingKnowledge('last')(xs), xs[-1])
    assert JumpingKnowledge('cat')(xs).shape == (N, D * L)

    print("KERNEL_OK")
</pallas_src>

<mosaic_0001>
module attributes {stable_mosaic.version = 11 : i64} {
  func.func @kernel(%arg0: i32, %arg1: memref<8x128xf32, #tpu.memory_space<vmem>>, %arg2: memref<8x128xf32, #tpu.memory_space<vmem>>, %arg3: memref<8x128xf32, #tpu.memory_space<vmem>>, %arg4: memref<8x128xf32, #tpu.memory_space<vmem>>, %arg5: memref<8x128xf32, #tpu.memory_space<vmem>>) attributes {dimension_semantics = [#tpu.dimension_semantics<parallel>], iteration_bounds = array<i64: 1>, scalar_prefetch = 0 : i64, scratch_operands = 0 : i64, tpu.core_type = #tpu.core_type<tc>, window_params = [{transform_indices = @transform_0, window_bounds = array<i64: 8, 128>}, {transform_indices = @transform_1, window_bounds = array<i64: 8, 128>}, {transform_indices = @transform_2, window_bounds = array<i64: 8, 128>}, {transform_indices = @transform_3, window_bounds = array<i64: 8, 128>}, {transform_indices = @transform_4, window_bounds = array<i64: 8, 128>}]} {
    %c0 = arith.constant 0 : index
    %c0_0 = arith.constant 0 : index
    %0 = vector.load %arg1[%c0, %c0_0] : memref<8x128xf32, #tpu.memory_space<vmem>>, vector<8x128xf32>
    %c0_1 = arith.constant 0 : index
    %c0_2 = arith.constant 0 : index
    %1 = vector.load %arg2[%c0_1, %c0_2] : memref<8x128xf32, #tpu.memory_space<vmem>>, vector<8x128xf32>
    %2 = arith.maximumf %0, %1 : vector<8x128xf32>
    %c0_3 = arith.constant 0 : index
    %c0_4 = arith.constant 0 : index
    %3 = vector.load %arg3[%c0_3, %c0_4] : memref<8x128xf32, #tpu.memory_space<vmem>>, vector<8x128xf32>
    %4 = arith.maximumf %2, %3 : vector<8x128xf32>
    %c0_5 = arith.constant 0 : index
    %c0_6 = arith.constant 0 : index
    %5 = vector.load %arg4[%c0_5, %c0_6] : memref<8x128xf32, #tpu.memory_space<vmem>>, vector<8x128xf32>
    %6 = arith.maximumf %4, %5 : vector<8x128xf32>
    %c0_7 = arith.constant 0 : index
    %c0_8 = arith.constant 0 : index
    %7 = vector.load %arg5[%c0_7, %c0_8] : memref<8x128xf32, #tpu.memory_space<vmem>>, vector<8x128xf32>
    tpu.vector_store %arg5[%c0_7, %c0_8], %6 {strides = array<i32>} : memref<8x128xf32, #tpu.memory_space<vmem>>, vector<8x128xf32>,
    return
  }
  func.func @transform_0(%arg0: i32) -> (i32, i32) {
    %c0_i32 = arith.constant 0 : i32
    %c0_i32_0 = arith.constant 0 : i32
    return %arg0, %c0_i32 : i32, i32
  }
  func.func @transform_1(%arg0: i32) -> (i32, i32) {
    %c0_i32 = arith.constant 0 : i32
    %c0_i32_0 = arith.constant 0 : i32
    return %arg0, %c0_i32 : i32, i32
  }
  func.func @transform_2(%arg0: i32) -> (i32, i32) {
    %c0_i32 = arith.constant 0 : i32
    %c0_i32_0 = arith.constant 0 : i32
    return %arg0, %c0_i32 : i32, i32
  }
  func.func @transform_3(%arg0: i32) -> (i32, i32) {
    %c0_i32 = arith.constant 0 : i32
    %c0_i32_0 = arith.constant 0 : i32
    return %arg0, %c0_i32 : i32, i32
  }
  func.func @transform_4(%arg0: i32) -> (i32, i32) {
    %c0_i32 = arith.constant 0 : i32
    %c0_i32_0 = arith.constant 0 : i32
    return %arg0, %c0_i32 : i32, i32
  }
}

</mosaic_0001>

<bundles_post_ra>
// kernel: tpu_custom_call.1
= control target key start
LH: loop header
LB: loop body
LE: loop exit
PB: predicated region body
PF: predicated region fallthrough
CT: control target
= control target key end

     0   :  { %9 = vsyncpa [#allocation3], 0  ;;  %s255_s0 = inlined_call_operand.hbm [shape: f32[8,128], index: 0, kind: input, shape index: {}]   ;;  %s256_s1 = inlined_call_operand.hbm [shape: f32[8,128], index: 1, kind: input, shape index: {}]   ;;  %s257_s2 = inlined_call_operand.hbm [shape: f32[8,128], index: 2, kind: input, shape index: {}]   ;;  %s258_s3 = inlined_call_operand.vmem [shape: f32[8,128], index: 3, kind: input, shape index: {}]   ;;  %s259_s4 = inlined_call_operand.hbm [shape: f32[8,128], index: 4, kind: output, shape index: {}]  }
   0x1   :  { %10 = vsyncpa [#allocation6], 0 }
   0x2   :  { %11 = vsyncpa [#allocation4], 0  ;;  %s175_s15 = smov [#allocation5]   ;;  %s176_s17 = smov [#allocation2]  }
   0x3   :  { %s28_s16 = sshll.u32 %s175_s15, 4  ;;  %s18_s18 = sshll.u32 %s176_s17, 4  ;;  %s29_s16 = int_to_ptr.vmem [resolvable:$true] %s28_s16  ;;  %s19_s18 = int_to_ptr.vmem [resolvable:$true] %s18_s18 }
   0x4   :  { %s81_s21 = scalar_lea.hbm %s256_s1, 128 }
   0x5   :  { %p82_p0 = scmp.ne.s32.totalorder %s256_s1, %s81_s21  ;;  %p85_p1 = scmp.lt.u32.totalorder %s81_s21, %s256_s1 }
   0x7   :  { %p87_p2 = pnand %p85_p1, %p82_p0 }
   0x9   :  { %90 = shalt.err (!%p87_p2)
}
   0xa   :  { %s91_s26 = scalar_lea.vmem %s29_s16, 128  ;;  %p96_p4 = scmp.lt.s32.totalorder %s29_s16, %s29_s16 }
   0xb   :  { %p92_p3 = scmp.ne.s32.totalorder %s29_s16, %s91_s26  ;;  %p97_p5 = scmp.lt.s32.totalorder %s91_s26, %s91_s26 }
   0xd   :  { %p98_p6 = por %p97_p5, %p96_p4 }
   0xf   :  { %p99_p7 = pnand %p98_p6, %p92_p3 }
  0x11   :  { %102 = shalt.err (!%p99_p7)
}
  0x12   :  { %31 = dma.hbm_to_vmem [thread:$0]  %s256_s1, 128, %s29_s16, [#allocation6]  }
  0x13   :  { %s103_s5 = scalar_lea.hbm %s255_s0, 128 }
  0x14   :  { %p104_p8 = scmp.ne.s32.totalorder %s255_s0, %s103_s5  ;;  %p107_p9 = scmp.lt.u32.totalorder %s103_s5, %s255_s0 }
  0x16   :  { %p109_p10 = pnand %p107_p9, %p104_p8 }
  0x18   :  { %112 = shalt.err (!%p109_p10)
}
  0x19   :  { %s113_s10 = scalar_lea.vmem %s19_s18, 128  ;;  %p118_p12 = scmp.lt.s32.totalorder %s19_s18, %s19_s18 }
  0x1a   :  { %p114_p11 = scmp.ne.s32.totalorder %s19_s18, %s113_s10  ;;  %p119_p13 = scmp.lt.s32.totalorder %s113_s10, %s113_s10 }
  0x1c   :  { %p120_p0 = por %p119_p13, %p118_p12 }
  0x1e   :  { %p121_p1 = pnand %p120_p0, %p114_p11 }
  0x20   :  { %124 = shalt.err (!%p121_p1)
}
  0x21   :  { %21 = dma.hbm_to_vmem [thread:$0]  %s255_s0, 128, %s19_s18, [#allocation3]  }
  0x22   :  { %s177_s12 = smov [#allocation7]   ;;  %s125_s16 = scalar_lea.hbm %s257_s2, 128 }
  0x23   :  { %s38_s13 = sshll.u32 %s177_s12, 4  ;;  %p126_p2 = scmp.ne.s32.totalorder %s257_s2, %s125_s16  ;;  %s39_s13 = int_to_ptr.vmem [resolvable:$true] %s38_s13 }
  0x24   :  { %p129_p3 = scmp.lt.u32.totalorder %s125_s16, %s257_s2 }
  0x26   :  { %p131_p4 = pnand %p129_p3, %p126_p2 }
  0x28   :  { %134 = shalt.err (!%p131_p4)
}
  0x29   :  { %s135_s22 = scalar_lea.vmem %s39_s13, 128  ;;  %p140_p6 = scmp.lt.s32.totalorder %s39_s13, %s39_s13 }
  0x2a   :  { %p136_p5 = scmp.ne.s32.totalorder %s39_s13, %s135_s22  ;;  %p141_p7 = scmp.lt.s32.totalorder %s135_s22, %s135_s22 }
  0x2c   :  { %p142_p8 = por %p141_p7, %p140_p6 }
  0x2e   :  { %p143_p9 = pnand %p142_p8, %p136_p5 }
  0x30   :  { %146 = shalt.err (!%p143_p9)
}
  0x31   :  { %41 = dma.hbm_to_vmem [thread:$0]  %s257_s2, 128, %s39_s13, [#allocation6]  }
  0x32   :  { %169 = dma.done.wait [#allocation3], 128  }
  0x33   :  { %170 = vsyncadd [#allocation3], 4294967168 }
  0x34   :  { %171 = dma.done.wait [#allocation6], 256  }
  0x35   :  { %172 = vsyncadd [#allocation6], 4294967040  ;;  %v53_v0 = vld [vmem:[#allocation2] sm:$0xff]  ;;  %v54_v1 = vld [vmem:[#allocation5] sm:$0xff]  ;;  %s178_s25 = smov [#allocation8]  }
  0x36   :  { %v56_v2 = vld [vmem:[#allocation7] sm:$0xff]  ;;  %v55_v3 = vmax.f32 %v53_v0, %v54_v1  ;;  %v58_v4 = vld [vmem:[%s258_s3] sm:$0xff]  ;;  %s67_s26 = sshll.u32 %s178_s25, 4  ;;  %s68_s26 = int_to_ptr.vmem [resolvable:$true] %s67_s26 }
  0x37   :  { %s147_s27 = scalar_lea.vmem %s68_s26, 128  ;;  %p152_p11 = scmp.lt.s32.totalorder %s68_s26, %s68_s26 }
  0x38   :  { %v57_v5 = vmax.f32 %v55_v3, %v56_v2  ;;  %p148_p10 = scmp.ne.s32.totalorder %s68_s26, %s147_s27  ;;  %p153_p12 = scmp.lt.s32.totalorder %s147_s27, %s147_s27 }
  0x3a   :  { %v59_v6 = vmax.f32 %v57_v5, %v58_v4  ;;  %p154_p13 = por %p153_p12, %p152_p11 }
  0x3c   :  { %60 = vst [vmem:[#allocation8] sm:$0xff] %v59_v6  ;;  %p155_p0 = pnand %p154_p13, %p148_p10 }
  0x3e   :  { %158 = shalt.err (!%p155_p0)
}
  0x3f   :  { %s159_s29 = scalar_lea.hbm %s259_s4, 128 }
  0x40   :  { %p160_p1 = scmp.ne.s32.totalorder %s259_s4, %s159_s29  ;;  %p163_p2 = scmp.lt.u32.totalorder %s159_s29, %s259_s4 }
  0x42   :  { %p165_p3 = pnand %p163_p2, %p160_p1 }
  0x44   :  { %168 = shalt.err (!%p165_p3)
}
  0x45   :  { %70 = dma.vmem_to_hbm [thread:$0]  %s68_s26, 128, %s259_s4, [#allocation4]  }
  0x46   :  { %173 = dma.done.wait [#allocation4], 128  }
  0x47   :  { %174 = vsyncadd [#allocation4], 4294967168 }
  0x48   :  { %74 = vsyncpa [#allocation3], 1 }
  0x49   :  { %75 = vsyncpa [#allocation6], 1 }
  0x4a   :  { %76 = vsyncpa [#allocation4], 1 }

</bundles_post_ra>
